<compile_context>
chip_gen: v6e
topology: v6e:2x2x1
jax: 0.10.0
libtpu: 0.0.40
codegen_flags: <defaults>
</compile_context>

<pallas_src>
import jax
import jax.numpy as jnp
from jax.experimental import pallas as pl
from jax.experimental.pallas import tpu as pltpu

LANE = 128       # hidden dim is zero-padded to a multiple of the lane width
SUBLANE = 8
BLOCK_B = 128    # batch block size once B is large (must be a multiple of 128)


def _round_up(a, m):
    return (a + m - 1) // m * m


def _rnn_predictor_kernel(x_ref, wih_ref, whh_ref, b_ref, wfc_ref, bfc_ref,
                          out_ref):
    """One batch block: full recurrence + final Linear.

    Shapes (Hp = hidden size padded to lane width, TB = batch block):
      x_ref   : (T, TB)      time-major, input_size==1 dim dropped
                (T, TB, I)   when input_size > 1
      wih_ref : (I, Hp)      W_ih^T, zero-padded, f32
      whh_ref : (Hp, Hp)     W_hh^T, zero-padded, f32 or bf16 (MXU dtype)
      b_ref   : (1, Hp)      b_ih + b_hh, zero-padded, f32
      wfc_ref : (1, Hp) if O == 1 else (Hp, O)   W_fc (zero-padded along H)
      bfc_ref : (O, 1)
      out_ref : (O, TB)      lane-dense (batch along lanes)
    """
    T = x_ref.shape[0]
    TB = x_ref.shape[1]
    Hp = whh_ref.shape[0]
    O = out_ref.shape[0]
    mxu_dtype = whh_ref.dtype

    wih = wih_ref[...]                       # (I, Hp) f32
    b = b_ref[...]                           # (1, Hp) f32
    whh = whh_ref[...]                       # (Hp, Hp) loop-invariant MXU rhs

    # ---- Hoisted, TIME-MAJOR pre-activation (off the serial chain).
    x = x_ref[...]
    if len(x_ref.shape) == 2:                # input_size == 1: pure VPU path
        pre = (x[:, :, None] * wih.reshape(1, 1, Hp)
               + b.reshape(1, 1, Hp))        # (T, TB, Hp)
    else:
        I = x_ref.shape[2]
        pre = (jnp.dot(x.reshape(T * TB, I), wih,
                       preferred_element_type=jnp.float32)
               .reshape(T, TB, Hp) + b.reshape(1, 1, Hp))

    def step(h, pre_t):
        # Only operand of the serial chain that touches the MXU; cast to the
        # MXU dtype (bf16 on v6e/v7x fast path), accumulate in f32, tanh in
        # f32 on the EUP.
        return jnp.tanh(pre_t + jnp.dot(h.astype(mxu_dtype), whh,
                                        preferred_element_type=jnp.float32))

    h = jnp.zeros((TB, Hp), jnp.float32)
    if T <= 16:
        # Small static T: full unroll gives the scheduler maximum visibility.
        for t in range(T):
            h = step(h, pre[t])              # leading-axis slice: free offset
    else:
        # Large T: bound vreg live ranges / compile time with partial unroll.
        h = jax.lax.fori_loop(0, T, lambda t, hh: step(hh, pre[t]), h,
                              unroll=4)

    # ---- Final Linear, lane-dense (O, TB) output.
    if O == 1:
        out = jnp.sum(h * wfc_ref[...], axis=-1)[None, :] + bfc_ref[...]
    else:
        out = (jnp.transpose(jnp.dot(h, wfc_ref[...],
                                     preferred_element_type=jnp.float32))
               + bfc_ref[...])
    out_ref[...] = out.astype(out_ref.dtype)


def prepare_params(w_ih, w_hh, b_ih, b_hh, w_fc, b_fc, *,
                   mxu_dtype=jnp.float32, lane=LANE):
    """One-time weight prep: transpose, bias fold, zero-pad H to lane width.

    Zero padding is exact: padded hidden units stay tanh(0) = 0 forever (true
    in both f32 and bf16) and contribute nothing to the output.  `mxu_dtype`
    controls the dtype of the recurrent weight (bf16 = native MXU path on
    v6e/v7x); everything else stays f32.
    """
    H, I = w_ih.shape
    O = w_fc.shape[0]
    Hp = _round_up(H, lane)

    wih_p = jnp.zeros((I, Hp), jnp.float32).at[:, :H].set(
        jnp.transpose(w_ih).astype(jnp.float32))
    whh_p = jnp.zeros((Hp, Hp), jnp.float32).at[:H, :H].set(
        jnp.transpose(w_hh).astype(jnp.float32)).astype(mxu_dtype)
    b_p = jnp.zeros((1, Hp), jnp.float32).at[:, :H].set(
        (b_ih + b_hh).reshape(1, H).astype(jnp.float32))
    if O == 1:
        wfc_p = jnp.zeros((1, Hp), jnp.float32).at[:, :H].set(
            w_fc.reshape(1, H).astype(jnp.float32))
    else:
        wfc_p = jnp.zeros((Hp, O), jnp.float32).at[:H, :].set(
            jnp.transpose(w_fc).astype(jnp.float32))
    bfc_p = b_fc.reshape(O, 1).astype(jnp.float32)
    return wih_p, whh_p, b_p, wfc_p, bfc_p


@jax.jit
def rnn_predictor(x, wih_p, whh_p, b_p, wfc_p, bfc_p):
    """x: (B, T, I) float32, batch_first like the PyTorch module."""
    B, T, I = x.shape
    O = bfc_p.shape[0]

    # Time-major + drop the degenerate I==1 lane dim at the boundary.
    if I == 1:
        x_tm = jnp.transpose(x[:, :, 0])                  # (T, B)
    else:
        x_tm = jnp.transpose(x, (1, 0, 2))                # (T, B, I)

    # Batch blocking: single sublane-padded block for small B, 128-wide blocks
    # (lane-dim legal) for large B.  Padded rows are ignored at the end.
    TB = _round_up(B, SUBLANE) if B <= BLOCK_B else BLOCK_B
    Bp = _round_up(B, TB)
    if Bp != B:
        pad = ((0, 0), (0, Bp - B)) if I == 1 else ((0, 0), (0, Bp - B), (0, 0))
        x_tm = jnp.pad(x_tm, pad)
    nb = Bp // TB

    x_block = (T, TB) if I == 1 else (T, TB, I)
    x_map = (lambda i: (0, i)) if I == 1 else (lambda i: (0, i, 0))

    def resident(arr):  # weights: constant index_map => stay resident in VMEM
        shape = arr.shape
        return pl.BlockSpec(shape, lambda i: (0,) * len(shape))

    out_p = pl.pallas_call(
        _rnn_predictor_kernel,
        out_shape=jax.ShapeDtypeStruct((O, Bp), jnp.float32),
        grid=(nb,),
        in_specs=[pl.BlockSpec(x_block, x_map),
                  resident(wih_p), resident(whh_p), resident(b_p),
                  resident(wfc_p), resident(bfc_p)],
        out_specs=pl.BlockSpec((O, TB), lambda i: (0, i)),
        compiler_params=pltpu.CompilerParams(
            dimension_semantics=("parallel",),          # 2 TCs on v7x
            vmem_limit_bytes=32 * 1024 * 1024),
    )(x_tm, wih_p, whh_p, b_p, wfc_p, bfc_p)

    return jnp.transpose(out_p)[:B]                      # (B, O)


def rnn_predictor_ref(x, w_ih, w_hh, b_ih, b_hh, w_fc, b_fc):
    """Pure-JAX reference of the PyTorch forward (full f32 precision)."""
    hp = jax.lax.Precision.HIGHEST
    B, T, I = x.shape
    H = w_hh.shape[0]
    h = jnp.zeros((B, H), jnp.float32)
    for t in range(T):
        h = jnp.tanh(jnp.dot(x[:, t, :], w_ih.T, precision=hp) + b_ih
                     + jnp.dot(h, w_hh.T, precision=hp) + b_hh)
    return jnp.dot(h, w_fc.T, precision=hp) + b_fc


if __name__ == "__main__":
    # Module hyper-params (from __init__ defaults).
    input_size, hidden_size, output_size = 1, 64, 1
    B, T = 2, 8

    key = jax.random.PRNGKey(0)
    ks = jax.random.split(key, 7)

    # Deterministic init matching PyTorch's U(-1/sqrt(H), 1/sqrt(H)) scheme.
    k = 1.0 / jnp.sqrt(jnp.float32(hidden_size))
    w_ih = jax.random.uniform(ks[0], (hidden_size, input_size),
                              jnp.float32, -k, k)
    w_hh = jax.random.uniform(ks[1], (hidden_size, hidden_size),
                              jnp.float32, -k, k)
    b_ih = jax.random.uniform(ks[2], (hidden_size,), jnp.float32, -k, k)
    b_hh = jax.random.uniform(ks[3], (hidden_size,), jnp.float32, -k, k)
    w_fc = jax.random.uniform(ks[4], (output_size, hidden_size),
                              jnp.float32, -k, k)
    b_fc = jax.random.uniform(ks[5], (output_size,), jnp.float32, -k, k)

    # Example input, batch_first like the PyTorch module: (B, T, input_size).
    x = jax.random.normal(ks[6], (B, T, input_size), jnp.float32)

    ref = rnn_predictor_ref(x, w_ih, w_hh, b_ih, b_hh, w_fc, b_fc)

    # Exact f32 MXU path (default): tight tolerance.
    params_f32 = jax.block_until_ready(
        prepare_params(w_ih, w_hh, b_ih, b_hh, w_fc, b_fc,
                       mxu_dtype=jnp.float32))
    out_f32 = jax.block_until_ready(rnn_predictor(x, *params_f32))
    assert out_f32.shape == (B, output_size), out_f32.shape
    assert jnp.allclose(out_f32, ref, rtol=1e-4, atol=1e-5), (out_f32, ref)

    # bf16 recurrent-weight MXU path (v6e/v7x fast path): looser tolerance
    # because rounding compounds over the T-step recurrence.
    params_bf16 = jax.block_until_ready(
        prepare_params(w_ih, w_hh, b_ih, b_hh, w_fc, b_fc,
                       mxu_dtype=jnp.bfloat16))
    out_bf16 = jax.block_until_ready(rnn_predictor(x, *params_bf16))
    assert out_bf16.shape == (B, output_size), out_bf16.shape
    assert jnp.allclose(out_bf16, ref, rtol=2e-2, atol=1e-2), (out_bf16, ref)

    print("KERNEL_OK")
</pallas_src>

<mosaic_0001>
module attributes {stable_mosaic.version = 11 : i64} {
  func.func @_rnn_predictor_kernel(%arg0: i32, %arg1: memref<8x8xf32, #tpu.memory_space<vmem>>, %arg2: memref<1x128xf32, #tpu.memory_space<vmem>>, %arg3: memref<128x128xf32, #tpu.memory_space<vmem>>, %arg4: memref<1x128xf32, #tpu.memory_space<vmem>>, %arg5: memref<1x128xf32, #tpu.memory_space<vmem>>, %arg6: memref<1x1xf32, #tpu.memory_space<vmem>>, %arg7: memref<1x8xf32, #tpu.memory_space<vmem>>) attributes {dimension_semantics = [#tpu.dimension_semantics<parallel>], iteration_bounds = array<i64: 1>, scalar_prefetch = 0 : i64, scratch_operands = 0 : i64, tpu.core_type = #tpu.core_type<tc>, window_params = [{transform_indices = @transform_0, window_bounds = array<i64: 8, 8>}, {pipeline_mode = #tpu.pipeline_mode<synchronous>, transform_indices = @transform_1, window_bounds = array<i64: 1, 128>}, {pipeline_mode = #tpu.pipeline_mode<synchronous>, transform_indices = @transform_2, window_bounds = array<i64: 128, 128>}, {pipeline_mode = #tpu.pipeline_mode<synchronous>, transform_indices = @transform_3, window_bounds = array<i64: 1, 128>}, {pipeline_mode = #tpu.pipeline_mode<synchronous>, transform_indices = @transform_4, window_bounds = array<i64: 1, 128>}, {pipeline_mode = #tpu.pipeline_mode<synchronous>, transform_indices = @transform_5, window_bounds = array<i64: 1, 1>}, {transform_indices = @transform_6, window_bounds = array<i64: 1, 8>}]} {
    %c0 = arith.constant 0 : index
    %c0_0 = arith.constant 0 : index
    %0 = vector.load %arg2[%c0, %c0_0] : memref<1x128xf32, #tpu.memory_space<vmem>>, vector<1x128xf32>
    %c0_1 = arith.constant 0 : index
    %c0_2 = arith.constant 0 : index
    %1 = vector.load %arg4[%c0_1, %c0_2] : memref<1x128xf32, #tpu.memory_space<vmem>>, vector<1x128xf32>
    %c0_3 = arith.constant 0 : index
    %c0_4 = arith.constant 0 : index
    %2 = vector.load %arg3[%c0_3, %c0_4] : memref<128x128xf32, #tpu.memory_space<vmem>>, vector<128x128xf32>
    %c0_5 = arith.constant 0 : index
    %c0_6 = arith.constant 0 : index
    %3 = vector.load %arg1[%c0_5, %c0_6] : memref<8x8xf32, #tpu.memory_space<vmem>>, vector<8x8xf32>
    %4 = vector.shape_cast %3 : vector<8x8xf32> to vector<8x8x1xf32>
    %5 = vector.shape_cast %0 : vector<1x128xf32> to vector<1x1x128xf32>
    %6 = vector.broadcast %4 : vector<8x8x1xf32> to vector<8x8x128xf32>
    %7 = vector.broadcast %5 : vector<1x1x128xf32> to vector<8x8x128xf32>
    %8 = arith.mulf %6, %7 : vector<8x8x128xf32>
    %9 = vector.shape_cast %1 : vector<1x128xf32> to vector<1x1x128xf32>
    %10 = vector.broadcast %9 : vector<1x1x128xf32> to vector<8x8x128xf32>
    %11 = arith.addf %8, %10 : vector<8x8x128xf32>
    %cst = arith.constant 0.000000e+00 : f32
    %12 = vector.broadcast %cst : f32 to vector<8x128xf32>
    %13 = vector.extract_strided_slice %11 {offsets = [0, 0, 0], sizes = [1, 8, 128], strides = [1, 1, 1]} : vector<8x8x128xf32> to vector<1x8x128xf32>
    %14 = vector.shape_cast %13 : vector<1x8x128xf32> to vector<8x128xf32>
    %cst_7 = arith.constant dense<0.000000e+00> : vector<8x128xf32>
    %15 = tpu.matmul %12, %2, %cst_7 {dimension_numbers = #tpu.dot_dimension_numbers<[1], [0], [0], [1], [0, 0, 1, 1], [], []>} : vector<8x128xf32>, vector<128x128xf32>, vector<8x128xf32> -> vector<8x128xf32>
    %16 = arith.addf %14, %15 : vector<8x128xf32>
    %17 = math.tanh %16 : vector<8x128xf32>
    %18 = vector.extract_strided_slice %11 {offsets = [1, 0, 0], sizes = [1, 8, 128], strides = [1, 1, 1]} : vector<8x8x128xf32> to vector<1x8x128xf32>
    %19 = vector.shape_cast %18 : vector<1x8x128xf32> to vector<8x128xf32>
    %cst_8 = arith.constant dense<0.000000e+00> : vector<8x128xf32>
    %20 = tpu.matmul %17, %2, %cst_8 {dimension_numbers = #tpu.dot_dimension_numbers<[1], [0], [0], [1], [0, 0, 1, 1], [], []>} : vector<8x128xf32>, vector<128x128xf32>, vector<8x128xf32> -> vector<8x128xf32>
    %21 = arith.addf %19, %20 : vector<8x128xf32>
    %22 = math.tanh %21 : vector<8x128xf32>
    %23 = vector.extract_strided_slice %11 {offsets = [2, 0, 0], sizes = [1, 8, 128], strides = [1, 1, 1]} : vector<8x8x128xf32> to vector<1x8x128xf32>
    %24 = vector.shape_cast %23 : vector<1x8x128xf32> to vector<8x128xf32>
    %cst_9 = arith.constant dense<0.000000e+00> : vector<8x128xf32>
    %25 = tpu.matmul %22, %2, %cst_9 {dimension_numbers = #tpu.dot_dimension_numbers<[1], [0], [0], [1], [0, 0, 1, 1], [], []>} : vector<8x128xf32>, vector<128x128xf32>, vector<8x128xf32> -> vector<8x128xf32>
    %26 = arith.addf %24, %25 : vector<8x128xf32>
    %27 = math.tanh %26 : vector<8x128xf32>
    %28 = vector.extract_strided_slice %11 {offsets = [3, 0, 0], sizes = [1, 8, 128], strides = [1, 1, 1]} : vector<8x8x128xf32> to vector<1x8x128xf32>
    %29 = vector.shape_cast %28 : vector<1x8x128xf32> to vector<8x128xf32>
    %cst_10 = arith.constant dense<0.000000e+00> : vector<8x128xf32>
    %30 = tpu.matmul %27, %2, %cst_10 {dimension_numbers = #tpu.dot_dimension_numbers<[1], [0], [0], [1], [0, 0, 1, 1], [], []>} : vector<8x128xf32>, vector<128x128xf32>, vector<8x128xf32> -> vector<8x128xf32>
    %31 = arith.addf %29, %30 : vector<8x128xf32>
    %32 = math.tanh %31 : vector<8x128xf32>
    %33 = vector.extract_strided_slice %11 {offsets = [4, 0, 0], sizes = [1, 8, 128], strides = [1, 1, 1]} : vector<8x8x128xf32> to vector<1x8x128xf32>
    %34 = vector.shape_cast %33 : vector<1x8x128xf32> to vector<8x128xf32>
    %cst_11 = arith.constant dense<0.000000e+00> : vector<8x128xf32>
    %35 = tpu.matmul %32, %2, %cst_11 {dimension_numbers = #tpu.dot_dimension_numbers<[1], [0], [0], [1], [0, 0, 1, 1], [], []>} : vector<8x128xf32>, vector<128x128xf32>, vector<8x128xf32> -> vector<8x128xf32>
    %36 = arith.addf %34, %35 : vector<8x128xf32>
    %37 = math.tanh %36 : vector<8x128xf32>
    %38 = vector.extract_strided_slice %11 {offsets = [5, 0, 0], sizes = [1, 8, 128], strides = [1, 1, 1]} : vector<8x8x128xf32> to vector<1x8x128xf32>
    %39 = vector.shape_cast %38 : vector<1x8x128xf32> to vector<8x128xf32>
    %cst_12 = arith.constant dense<0.000000e+00> : vector<8x128xf32>
    %40 = tpu.matmul %37, %2, %cst_12 {dimension_numbers = #tpu.dot_dimension_numbers<[1], [0], [0], [1], [0, 0, 1, 1], [], []>} : vector<8x128xf32>, vector<128x128xf32>, vector<8x128xf32> -> vector<8x128xf32>
    %41 = arith.addf %39, %40 : vector<8x128xf32>
    %42 = math.tanh %41 : vector<8x128xf32>
    %43 = vector.extract_strided_slice %11 {offsets = [6, 0, 0], sizes = [1, 8, 128], strides = [1, 1, 1]} : vector<8x8x128xf32> to vector<1x8x128xf32>
    %44 = vector.shape_cast %43 : vector<1x8x128xf32> to vector<8x128xf32>
    %cst_13 = arith.constant dense<0.000000e+00> : vector<8x128xf32>
    %45 = tpu.matmul %42, %2, %cst_13 {dimension_numbers = #tpu.dot_dimension_numbers<[1], [0], [0], [1], [0, 0, 1, 1], [], []>} : vector<8x128xf32>, vector<128x128xf32>, vector<8x128xf32> -> vector<8x128xf32>
    %46 = arith.addf %44, %45 : vector<8x128xf32>
    %47 = math.tanh %46 : vector<8x128xf32>
    %48 = vector.extract_strided_slice %11 {offsets = [7, 0, 0], sizes = [1, 8, 128], strides = [1, 1, 1]} : vector<8x8x128xf32> to vector<1x8x128xf32>
    %49 = vector.shape_cast %48 : vector<1x8x128xf32> to vector<8x128xf32>
    %cst_14 = arith.constant dense<0.000000e+00> : vector<8x128xf32>
    %50 = tpu.matmul %47, %2, %cst_14 {dimension_numbers = #tpu.dot_dimension_numbers<[1], [0], [0], [1], [0, 0, 1, 1], [], []>} : vector<8x128xf32>, vector<128x128xf32>, vector<8x128xf32> -> vector<8x128xf32>
    %51 = arith.addf %49, %50 : vector<8x128xf32>
    %52 = math.tanh %51 : vector<8x128xf32>
    %c0_15 = arith.constant 0 : index
    %c0_16 = arith.constant 0 : index
    %53 = vector.load %arg5[%c0_15, %c0_16] : memref<1x128xf32, #tpu.memory_space<vmem>>, vector<1x128xf32>
    %54 = vector.broadcast %53 : vector<1x128xf32> to vector<8x128xf32>
    %55 = arith.mulf %52, %54 : vector<8x128xf32>
    %cst_17 = arith.constant dense<0.000000e+00> : vector<8xf32>
    %56 = vector.multi_reduction <add>, %55, %cst_17 [1] : vector<8x128xf32> to vector<8xf32>
    %57 = vector.shape_cast %56 : vector<8xf32> to vector<1x8xf32>
    %c0_18 = arith.constant 0 : index
    %c0_19 = arith.constant 0 : index
    %58 = vector.load %arg6[%c0_18, %c0_19] : memref<1x1xf32, #tpu.memory_space<vmem>>, vector<1x1xf32>
    %59 = vector.broadcast %58 : vector<1x1xf32> to vector<1x8xf32>
    %60 = arith.addf %57, %59 : vector<1x8xf32>
    %c0_20 = arith.constant 0 : index
    %c0_21 = arith.constant 0 : index
    %61 = vector.load %arg7[%c0_20, %c0_21] : memref<1x8xf32, #tpu.memory_space<vmem>>, vector<1x8xf32>
    tpu.vector_store %arg7[%c0_20, %c0_21], %60 {strides = array<i32>} : memref<1x8xf32, #tpu.memory_space<vmem>>, vector<1x8xf32>,
    return
  }
  func.func @transform_0(%arg0: i32) -> (i32, i32) {
    %c0_i32 = arith.constant 0 : i32
    %c0_i32_0 = arith.constant 0 : i32
    return %c0_i32, %arg0 : i32, i32
  }
  func.func @transform_1(%arg0: i32) -> (i32, i32) {
    %c0_i32 = arith.constant 0 : i32
    %c0_i32_0 = arith.constant 0 : i32
    %c0_i32_1 = arith.constant 0 : i32
    return %c0_i32, %c0_i32_0 : i32, i32
  }
  func.func @transform_2(%arg0: i32) -> (i32, i32) {
    %c0_i32 = arith.constant 0 : i32
    %c0_i32_0 = arith.constant 0 : i32
    %c0_i32_1 = arith.constant 0 : i32
    return %c0_i32, %c0_i32_0 : i32, i32
  }
  func.func @transform_3(%arg0: i32) -> (i32, i32) {
    %c0_i32 = arith.constant 0 : i32
    %c0_i32_0 = arith.constant 0 : i32
    %c0_i32_1 = arith.constant 0 : i32
    return %c0_i32, %c0_i32_0 : i32, i32
  }
  func.func @transform_4(%arg0: i32) -> (i32, i32) {
    %c0_i32 = arith.constant 0 : i32
    %c0_i32_0 = arith.constant 0 : i32
    %c0_i32_1 = arith.constant 0 : i32
    return %c0_i32, %c0_i32_0 : i32, i32
  }
  func.func @transform_5(%arg0: i32) -> (i32, i32) {
    %c0_i32 = arith.constant 0 : i32
    %c0_i32_0 = arith.constant 0 : i32
    %c0_i32_1 = arith.constant 0 : i32
    return %c0_i32, %c0_i32_0 : i32, i32
  }
  func.func @transform_6(%arg0: i32) -> (i32, i32) {
    %c0_i32 = arith.constant 0 : i32
    %c0_i32_0 = arith.constant 0 : i32
    return %c0_i32, %arg0 : i32, i32
  }
}

</mosaic_0001>

<bundles_post_ra>
// kernel: rnn_predictor.1
= control target key start
LH: loop header
LB: loop body
LE: loop exit
PB: predicated region body
PF: predicated region fallthrough
CT: control target
= control target key end

     0   :  { %s1633_s0 = inlined_call_operand.vmem [shape: f32[8,8], index: 0, kind: input, shape index: {}]   ;;  %s1634_s1 = inlined_call_operand.vmem [shape: f32[1,128], index: 1, kind: input, shape index: {}]   ;;  %s1635_s2 = inlined_call_operand.hbm [shape: f32[128,128], index: 2, kind: input, shape index: {}]   ;;  %s1636_s3 = inlined_call_operand.vmem [shape: f32[1,128], index: 3, kind: input, shape index: {}]   ;;  %s1637_s4 = inlined_call_operand.vmem [shape: f32[1,128], index: 4, kind: input, shape index: {}]   ;;  %s1638_s5 = inlined_call_operand.<no memory space> [shape: f32[1,1], index: 5, kind: input, shape index: {}]   ;;  %s1639_s6 = inlined_call_operand.vmem [shape: f32[1,8], index: 6, kind: output, shape index: {}]  }
   0x1   :  { %v11_v0 = vstv %s1638_s5 }
   0x2   :  { %12 = vst [vmem:[#allocation2] sm:$0x1] %v11_v0 }
   0x3   :  { %13 = vsyncpa [#allocation4], 0  ;;  %s1219_s23 = smov [#allocation3]  }
   0x4   :  { %s23_s24 = sshll.u32 %s1219_s23, 4  ;;  %s24_s24 = int_to_ptr.vmem [resolvable:$true] %s23_s24 }
   0x5   :  { %s1205_s25 = scalar_lea.vmem %s24_s24, 2048  ;;  %p1210_p1 = scmp.lt.s32.totalorder %s24_s24, %s24_s24 }
   0x6   :  { %p1206_p0 = scmp.ne.s32.totalorder %s24_s24, %s1205_s25  ;;  %p1211_p2 = scmp.lt.s32.totalorder %s1205_s25, %s1205_s25 }
   0x8   :  { %p1212_p3 = por %p1211_p2, %p1210_p1 }
   0xa   :  { %p1213_p4 = pnand %p1212_p3, %p1206_p0 }
   0xc   :  { %1216 = shalt.err (!%p1213_p4)
}
   0xd   :  { %s1220_s26 = smov 128   ;;  %s1221_s27 = smov 8  }
   0xe   :  { %29 = dma.hbm_to_vmem [thread:$0]  %s1635_s2, 2048, %s24_s24, [#allocation4], %s1220_s26, %s1220_s26, %s1221_s27  }
   0xf   :  { %1217 = dma.done.wait [#allocation4], 2048  }
  0x10   :  { %1218 = vsyncadd [#allocation4], 4294965248  ;;  %v1222_v1 = vmov 0.0   ;;  %vm1223_vm0 = vmmov 0   ;;  %v58_v2 = vlaneseq  ;;  %v1275_v4 = vld [vmem:[#allocation3 + $0x78] sm:$0xff]  ;;  %v1277_v5 = vld [vmem:[#allocation3 + $0x70] sm:$0xff] }
  0x11   :  { %893 = vmatprep.subr.mxu0 %v1222_v1  ;;  %925 = vmatprep.mubr.msk.f32.mxu0 %vm1223_vm0, %v1222_v1  ;;  %v1282_v6 = vld [vmem:[#allocation3 + $0x68] sm:$0xff]  ;;  %v1289_v8 = vld [vmem:[#allocation3 + $0x60] sm:$0xff]  ;;  %v1300_v10 = vld [vmem:[#allocation3 + $0x58] sm:$0xff]  ;;  %vm747_vm1 = vcmask 57344  }
  0x12   :  { %928 = vmatprep.subr.mxu1 %v1222_v1  ;;  %960 = vmatprep.mubr.msk.f32.mxu1 %vm1223_vm0, %v1222_v1  ;;  %v1273_v3 = vshrl.u32 %v58_v2, 7  ;;  %v1296_v9 = vld [vmem:[%s1633_s0] sm:$0xff]  ;;  %v1309_v12 = vld [vmem:[#allocation3 + $0x50] sm:$0xff]  ;;  %v1314_v13 = vld [vmem:[#allocation3 + $0x48] sm:$0xff] }
  0x13   :  { %894 = vmatpush3.msra.mxu0 %v1275_v4  ;;  %929 = vmatpush3.msra.mxu1 %v1275_v4  ;;  %v1320_v14 = vld [vmem:[#allocation3 + $0x40] sm:$0xff]  ;;  %v1326_v15 = vld [vmem:[#allocation3 + $0x38] sm:$0xff]  ;;  %v1332_v16 = vld [vmem:[#allocation3 + $0x30] sm:$0xff] }
  0x14   :  { %895 = vmatprep.subr.mxu0 %v1222_v1  ;;  %v60_v7 = vsub.s32 0, %v1273_v3  ;;  %930 = vmatprep.subr.mxu1 %v1222_v1  ;;  %v1338_v17 = vld [vmem:[#allocation3 + $0x28] sm:$0xff]  ;;  %v1344_v18 = vld [vmem:[#allocation3 + $0x20] sm:$0xff]  ;;  %v1350_v19 = vld [vmem:[#allocation3 + $0x18] sm:$0xff]  ;;  %v67_v23 = vsub.s32 1, %v1273_v3  ;;  %v74_v34 = vsub.s32 2, %v1273_v3 }
  0x15   :  { %896 = vmatpush3.msra.mxu0 %v1277_v5  ;;  %931 = vmatpush3.msra.mxu1 %v1277_v5  ;;  %v1356_v20 = vld [vmem:[#allocation3 + $0x10] sm:$0xff]  ;;  %v1362_v21 = vld [vmem:[#allocation3 + $0x8] sm:$0xff]  ;;  %v1368_v22 = vld [vmem:[#allocation3] sm:$0xff]  ;;  %v81_v43 = vsub.s32 3, %v1273_v3  ;;  %v88_v52 = vsub.s32 4, %v1273_v3  ;;  %v95_v61 = vsub.s32 5, %v1273_v3 }
  0x16   :  { %897 = vmatprep.subr.mxu0 %v1222_v1  ;;  %932 = vmatprep.subr.mxu1 %v1222_v1  ;;  %v61_v11 = vrot.slane %v1296_v9, %v60_v7  ;;  %v68_v24 = vrot.slane %v1296_v9, %v67_v23  ;;  %v1420_v26 = vld [vmem:[%s1634_s1] ss:$0 sm:$0xff]  ;;  %v75_v35 = vrot.slane %v1296_v9, %v74_v34 }
  0x17   :  { %898 = vmatpush3.msra.mxu0 %v1282_v6  ;;  %933 = vmatpush3.msra.mxu1 %v1282_v6  ;;  %v1426_v28 = vld [vmem:[%s1636_s3] ss:$0 sm:$0xff]  ;;  %v82_v44 = vrot.slane %v1296_v9, %v81_v43  ;;  %v89_v53 = vrot.slane %v1296_v9, %v88_v52  ;;  %v96_v62 = vrot.slane %v1296_v9, %v95_v61 }
  0x18   :  { %899 = vmatprep.subr.mxu0 %v1222_v1  ;;  %934 = vmatprep.subr.mxu1 %v1222_v1 }
  0x19   :  { %900 = vmatpush3.msra.mxu0 %v1289_v8  ;;  %935 = vmatpush3.msra.mxu1 %v1289_v8 }
  0x1a   :  { %901 = vmatprep.subr.mxu0 %v1222_v1  ;;  %63 = vbcast.lane.b32.xlu0 %v61_v11, 256 }
  0x1b   :  { %902 = vmatpush3.msra.mxu0 %v1300_v10  ;;  %936 = vmatprep.subr.mxu1 %v1222_v1 }
  0x1c   :  { %903 = vmatprep.subr.mxu0 %v1222_v1  ;;  %937 = vmatpush3.msra.mxu1 %v1300_v10 }
  0x1d   :  { %904 = vmatpush3.msra.mxu0 %v1309_v12  ;;  %938 = vmatprep.subr.mxu1 %v1222_v1 }
  0x1e   :  { %905 = vmatprep.subr.mxu0 %v1222_v1  ;;  %939 = vmatpush3.msra.mxu1 %v1309_v12 }
  0x1f   :  { %906 = vmatpush3.msra.mxu0 %v1314_v13  ;;  %940 = vmatprep.subr.mxu1 %v1222_v1 }
  0x20   :  { %907 = vmatprep.subr.mxu0 %v1222_v1  ;;  %941 = vmatpush3.msra.mxu1 %v1314_v13 }
  0x21   :  { %908 = vmatpush3.msra.mxu0 %v1320_v14  ;;  %942 = vmatprep.subr.mxu1 %v1222_v1 }
  0x22   :  { %909 = vmatprep.subr.mxu0 %v1222_v1  ;;  %943 = vmatpush3.msra.mxu1 %v1320_v14 }
  0x23   :  { %910 = vmatpush3.msra.mxu0 %v1326_v15  ;;  %944 = vmatprep.subr.mxu1 %v1222_v1 }
  0x24   :  { %911 = vmatprep.subr.mxu0 %v1222_v1  ;;  %945 = vmatpush3.msra.mxu1 %v1326_v15 }
  0x25   :  { %912 = vmatpush3.msra.mxu0 %v1332_v16  ;;  %946 = vmatprep.subr.mxu1 %v1222_v1 }
  0x26   :  { %913 = vmatprep.subr.mxu0 %v1222_v1  ;;  %947 = vmatpush3.msra.mxu1 %v1332_v16 }
  0x27   :  { %914 = vmatpush3.msra.mxu0 %v1338_v17  ;;  %948 = vmatprep.subr.mxu1 %v1222_v1 }
  0x28   :  { %915 = vmatprep.subr.mxu0 %v1222_v1  ;;  %949 = vmatpush3.msra.mxu1 %v1338_v17 }
  0x29   :  { %916 = vmatpush3.msra.mxu0 %v1344_v18  ;;  %950 = vmatprep.subr.mxu1 %v1222_v1 }
  0x2a   :  { %917 = vmatprep.subr.mxu0 %v1222_v1  ;;  %951 = vmatpush3.msra.mxu1 %v1344_v18 }
  0x2b   :  { %918 = vmatpush3.msra.mxu0 %v1350_v19  ;;  %952 = vmatprep.subr.mxu1 %v1222_v1 }
  0x2c   :  { %919 = vmatprep.subr.mxu0 %v1222_v1  ;;  %953 = vmatpush3.msra.mxu1 %v1350_v19 }
  0x2d   :  { %920 = vmatpush3.msra.mxu0 %v1356_v20  ;;  %954 = vmatprep.subr.mxu1 %v1222_v1 }
  0x2e   :  { %921 = vmatprep.subr.mxu0 %v1222_v1  ;;  %955 = vmatpush3.msra.mxu1 %v1356_v20 }
  0x2f   :  { %922 = vmatpush3.msra.mxu0 %v1362_v21  ;;  %956 = vmatprep.subr.mxu1 %v1222_v1 }
  0x30   :  { %923 = vmatprep.subr.mxu0 %v1222_v1  ;;  %957 = vmatpush3.msra.mxu1 %v1362_v21 }
  0x31   :  { %924 = vmatpush3.msra.mxu0 %v1368_v22  ;;  %958 = vmatprep.subr.mxu1 %v1222_v1 }
  0x32   :  { %926 = vmatmul.mubr.f32.vlgmr.msra.gmra.mxu0 %v1222_v1  ;;  %959 = vmatpush3.msra.mxu1 %v1368_v22 }
  0x33   :  { %963 = vmatprep.subr.mxu0 %v1222_v1  ;;  %995 = vmatprep.mubr.msk.f32.mxu0 %vm1223_vm0, %v1222_v1 }
  0x34   :  { %964 = vmatpush3.msra.mxu0 %v1275_v4  ;;  %998 = vmatprep.subr.mxu1 %v1222_v1 }
  0x35   :  { %965 = vmatprep.subr.mxu0 %v1222_v1  ;;  %70 = vbcast.lane.b32.xlu0 %v68_v24, 256 }
  0x36   :  { %966 = vmatpush3.msra.mxu0 %v1277_v5  ;;  %77 = vbcast.lane.b32.xlu1 %v75_v35, 256 }
  0x37   :  { %967 = vmatprep.subr.mxu0 %v1222_v1 }
  0x38   :  { %968 = vmatpush3.msra.mxu0 %v1282_v6 }
  0x39   :  { %969 = vmatprep.subr.mxu0 %v1222_v1  ;;  %91 = vbcast.lane.b32.xlu0 %v89_v53, 256 }
  0x3a   :  { %970 = vmatpush3.msra.mxu0 %v1289_v8  ;;  %84 = vbcast.lane.b32.xlu1 %v82_v44, 256 }
  0x3b   :  { %971 = vmatprep.subr.mxu0 %v1222_v1 }
  0x3c   :  { %972 = vmatpush3.msra.mxu0 %v1300_v10 }
  0x3d   :  { %973 = vmatprep.subr.mxu0 %v1222_v1 }
  0x3e   :  { %974 = vmatpush3.msra.mxu0 %v1309_v12  ;;  %98 = vbcast.lane.b32.xlu1 %v96_v62, 256 }
  0x3f   :  { %975 = vmatprep.subr.mxu0 %v1222_v1 }
  0x40   :  { %976 = vmatpush3.msra.mxu0 %v1314_v13 }
  0x41   :  { %977 = vmatprep.subr.mxu0 %v1222_v1 }
  0x42   :  { %978 = vmatpush3.msra.mxu0 %v1320_v14 }
  0x43   :  { %979 = vmatprep.subr.mxu0 %v1222_v1 }
  0x44   :  { %980 = vmatpush3.msra.mxu0 %v1326_v15 }
  0x45   :  { %981 = vmatprep.subr.mxu0 %v1222_v1 }
  0x46   :  { %982 = vmatpush3.msra.mxu0 %v1332_v16 }
  0x47   :  { %983 = vmatprep.subr.mxu0 %v1222_v1 }
  0x48   :  { %984 = vmatpush3.msra.mxu0 %v1338_v17 }
  0x49   :  { %985 = vmatprep.subr.mxu0 %v1222_v1 }
  0x4a   :  { %986 = vmatpush3.msra.mxu0 %v1344_v18 }
  0x4b   :  { %987 = vmatprep.subr.mxu0 %v1222_v1 }
  0x4c   :  { %988 = vmatpush3.msra.mxu0 %v1350_v19 }
  0x4d   :  { %989 = vmatprep.subr.mxu0 %v1222_v1 }
  0x4e   :  { %990 = vmatpush3.msra.mxu0 %v1356_v20 }
  0x4f   :  { %991 = vmatprep.subr.mxu0 %v1222_v1 }
  0x50   :  { %992 = vmatpush3.msra.mxu0 %v1362_v21 }
  0x51   :  { %993 = vmatprep.subr.mxu0 %v1222_v1 }
  0x52   :  { %994 = vmatpush3.msra.mxu0 %v1368_v22 }
  0x53   :  { %1033 = vmatprep.subr.mxu0 %v1222_v1 }
  0x8c   :  { %v64_v25 = vpop.permute.xlu0 %63 }
  0x8d   :  { %v120_v27 = vmul.f32 %v1420_v26, %v64_v25 }
  0x8f   :  { %v134_v29 = vadd.f32 %v1426_v28, %v120_v27 }
  0xa7   :  { %v71_v36 = vpop.permute.xlu0 %70 }
  0xa8   :  { %v121_v37 = vmul.f32 %v1420_v26, %v71_v36  ;;  %v78_v45 = vpop.permute.xlu1 %77 }
  0xa9   :  { %v122_v46 = vmul.f32 %v1420_v26, %v78_v45 }
  0xaa   :  { %v135_v38 = vadd.f32 %v1426_v28, %v121_v37  ;;  %v756_v37 = vld [vmem:[%s1637_s4] ss:$0 sm:$0xff] }
  0xab   :  { %v136_v47 = vadd.f32 %v1426_v28, %v122_v46  ;;  %v92_v63 = vpop.permute.xlu0 %91 }
  0xac   :  { %v85_v54 = vpop.permute.xlu1 %84  ;;  %v124_v0 = vmul.f32 %v1420_v26, %v92_v63 }
  0xad   :  { %v123_v55 = vmul.f32 %v1420_v26, %v85_v54 }
  0xae   :  { %v138_v11 = vadd.f32 %v1426_v28, %v124_v0 }
  0xaf   :  { %v137_v56 = vadd.f32 %v1426_v28, %v123_v55 }
  0xf2   :  { %v208_v30 = vpop.f32.mrf.mxu0 }
  0xf3   :  { %v212_v31 = vadd.f32 %v208_v30, %v134_v29  ;;  %v728_v30 = vld [vmem:[#allocation2] sm:$0x1] }
  0xf4   :  { %v927_v32 = vpop.f32.mrf.mxu0 }
  0xf5   :  { %1181 = vtanh.f32 %v212_v31  ;;  %v1224_v31 = vmov 0  }
  0xf6   :  { %1179 = vset.pattern.permute.xlu1 %v1224_v31  ;;  %1180 = vset.pattern.permute.xlu0 %v1224_v31 }
 0x102   :  { %v1182_v33 = vpop.eup %1181 }
 0x103   :  { %961 = vmatmul.mubr.f32.vlgmr.msra.gmra.mxu1 %v1182_v33 }
 0x104   :  { %999 = vmatpush3.msra.mxu1 %v1275_v4  ;;  %1030 = vmatprep.mubr.msk.f32.mxu1 %vm1223_vm0, %v1222_v1 }
 0x105   :  { %1000 = vmatprep.subr.mxu1 %v1222_v1 }
 0x106   :  { %1001 = vmatpush3.msra.mxu1 %v1277_v5 }
 0x107   :  { %1002 = vmatprep.subr.mxu1 %v1222_v1 }
 0x108   :  { %1003 = vmatpush3.msra.mxu1 %v1282_v6 }
 0x109   :  { %1004 = vmatprep.subr.mxu1 %v1222_v1 }
 0x10a   :  { %1005 = vmatpush3.msra.mxu1 %v1289_v8 }
 0x10b   :  { %1006 = vmatprep.subr.mxu1 %v1222_v1 }
 0x10c   :  { %1007 = vmatpush3.msra.mxu1 %v1300_v10 }
 0x10d   :  { %1008 = vmatprep.subr.mxu1 %v1222_v1 }
 0x10e   :  { %1009 = vmatpush3.msra.mxu1 %v1309_v12 }
 0x10f   :  { %1010 = vmatprep.subr.mxu1 %v1222_v1 }
 0x110   :  { %1011 = vmatpush3.msra.mxu1 %v1314_v13 }
 0x111   :  { %1012 = vmatprep.subr.mxu1 %v1222_v1 }
 0x112   :  { %1013 = vmatpush3.msra.mxu1 %v1320_v14 }
 0x113   :  { %1014 = vmatprep.subr.mxu1 %v1222_v1 }
 0x114   :  { %1015 = vmatpush3.msra.mxu1 %v1326_v15 }
 0x115   :  { %1016 = vmatprep.subr.mxu1 %v1222_v1 }
 0x116   :  { %1017 = vmatpush3.msra.mxu1 %v1332_v16 }
 0x117   :  { %1018 = vmatprep.subr.mxu1 %v1222_v1 }
 0x118   :  { %1019 = vmatpush3.msra.mxu1 %v1338_v17 }
 0x119   :  { %1020 = vmatprep.subr.mxu1 %v1222_v1 }
 0x11a   :  { %1021 = vmatpush3.msra.mxu1 %v1344_v18 }
 0x11b   :  { %1022 = vmatprep.subr.mxu1 %v1222_v1 }
 0x11c   :  { %1023 = vmatpush3.msra.mxu1 %v1350_v19 }
 0x11d   :  { %1024 = vmatprep.subr.mxu1 %v1222_v1 }
 0x11e   :  { %1025 = vmatpush3.msra.mxu1 %v1356_v20 }
 0x11f   :  { %1026 = vmatprep.subr.mxu1 %v1222_v1 }
 0x120   :  { %1027 = vmatpush3.msra.mxu1 %v1362_v21 }
 0x121   :  { %1028 = vmatprep.subr.mxu1 %v1222_v1 }
 0x122   :  { %1029 = vmatpush3.msra.mxu1 %v1368_v22 }
 0x123   :  { %1068 = vmatprep.subr.mxu1 %v1222_v1 }
 0x1c3   :  { %v280_v39 = vpop.f32.mrf.mxu1 }
 0x1c4   :  { %v284_v40 = vadd.f32 %v280_v39, %v135_v38 }
 0x1c5   :  { %v962_v41 = vpop.f32.mrf.mxu1 }
 0x1c6   :  { %1183 = vtanh.f32 %v284_v40  ;;  %v741_v41 = vand.u32 127, %v58_v2 }
 0x1d3   :  { %v1184_v42 = vpop.eup %1183 }
 0x1d4   :  { %996 = vmatmul.mubr.f32.vlgmr.msra.gmra.mxu0 %v1184_v42 }
 0x1d5   :  { %1034 = vmatpush3.msra.mxu0 %v1275_v4  ;;  %1065 = vmatprep.mubr.msk.f32.mxu0 %vm1223_vm0, %v1222_v1 }
 0x1d6   :  { %1035 = vmatprep.subr.mxu0 %v1222_v1 }
 0x1d7   :  { %1036 = vmatpush3.msra.mxu0 %v1277_v5 }
 0x1d8   :  { %1037 = vmatprep.subr.mxu0 %v1222_v1 }
 0x1d9   :  { %1038 = vmatpush3.msra.mxu0 %v1282_v6 }
 0x1da   :  { %1039 = vmatprep.subr.mxu0 %v1222_v1 }
 0x1db   :  { %1040 = vmatpush3.msra.mxu0 %v1289_v8 }
 0x1dc   :  { %1041 = vmatprep.subr.mxu0 %v1222_v1 }
 0x1dd   :  { %1042 = vmatpush3.msra.mxu0 %v1300_v10 }
 0x1de   :  { %1043 = vmatprep.subr.mxu0 %v1222_v1 }
 0x1df   :  { %1044 = vmatpush3.msra.mxu0 %v1309_v12 }
 0x1e0   :  { %1045 = vmatprep.subr.mxu0 %v1222_v1 }
 0x1e1   :  { %1046 = vmatpush3.msra.mxu0 %v1314_v13 }
 0x1e2   :  { %1047 = vmatprep.subr.mxu0 %v1222_v1 }
 0x1e3   :  { %1048 = vmatpush3.msra.mxu0 %v1320_v14 }
 0x1e4   :  { %1049 = vmatprep.subr.mxu0 %v1222_v1 }
 0x1e5   :  { %1050 = vmatpush3.msra.mxu0 %v1326_v15 }
 0x1e6   :  { %1051 = vmatprep.subr.mxu0 %v1222_v1 }
 0x1e7   :  { %1052 = vmatpush3.msra.mxu0 %v1332_v16 }
 0x1e8   :  { %1053 = vmatprep.subr.mxu0 %v1222_v1 }
 0x1e9   :  { %1054 = vmatpush3.msra.mxu0 %v1338_v17 }
 0x1ea   :  { %1055 = vmatprep.subr.mxu0 %v1222_v1 }
 0x1eb   :  { %1056 = vmatpush3.msra.mxu0 %v1344_v18 }
 0x1ec   :  { %1057 = vmatprep.subr.mxu0 %v1222_v1 }
 0x1ed   :  { %1058 = vmatpush3.msra.mxu0 %v1350_v19 }
 0x1ee   :  { %1059 = vmatprep.subr.mxu0 %v1222_v1 }
 0x1ef   :  { %1060 = vmatpush3.msra.mxu0 %v1356_v20 }
 0x1f0   :  { %1061 = vmatprep.subr.mxu0 %v1222_v1 }
 0x1f1   :  { %1062 = vmatpush3.msra.mxu0 %v1362_v21 }
 0x1f2   :  { %1063 = vmatprep.subr.mxu0 %v1222_v1 }
 0x1f3   :  { %1064 = vmatpush3.msra.mxu0 %v1368_v22 }
 0x1f4   :  { %1103 = vmatprep.subr.mxu0 %v1222_v1 }
 0x294   :  { %v352_v48 = vpop.f32.mrf.mxu0 }
 0x295   :  { %v356_v49 = vadd.f32 %v352_v48, %v136_v47 }
 0x296   :  { %v997_v50 = vpop.f32.mrf.mxu0 }
 0x297   :  { %1185 = vtanh.f32 %v356_v49 }
 0x2a4   :  { %v1186_v51 = vpop.eup %1185 }
 0x2a5   :  { %1031 = vmatmul.mubr.f32.vlgmr.msra.gmra.mxu1 %v1186_v51 }
 0x2a6   :  { %1069 = vmatpush3.msra.mxu1 %v1275_v4  ;;  %1100 = vmatprep.mubr.msk.f32.mxu1 %vm1223_vm0, %v1222_v1 }
 0x2a7   :  { %1070 = vmatprep.subr.mxu1 %v1222_v1 }
 0x2a8   :  { %1071 = vmatpush3.msra.mxu1 %v1277_v5 }
 0x2a9   :  { %1072 = vmatprep.subr.mxu1 %v1222_v1 }
 0x2aa   :  { %1073 = vmatpush3.msra.mxu1 %v1282_v6 }
 0x2ab   :  { %1074 = vmatprep.subr.mxu1 %v1222_v1 }
 0x2ac   :  { %1075 = vmatpush3.msra.mxu1 %v1289_v8 }
 0x2ad   :  { %1076 = vmatprep.subr.mxu1 %v1222_v1 }
 0x2ae   :  { %1077 = vmatpush3.msra.mxu1 %v1300_v10 }
 0x2af   :  { %1078 = vmatprep.subr.mxu1 %v1222_v1 }
 0x2b0   :  { %1079 = vmatpush3.msra.mxu1 %v1309_v12 }
 0x2b1   :  { %1080 = vmatprep.subr.mxu1 %v1222_v1 }
 0x2b2   :  { %1081 = vmatpush3.msra.mxu1 %v1314_v13 }
 0x2b3   :  { %1082 = vmatprep.subr.mxu1 %v1222_v1 }
 0x2b4   :  { %1083 = vmatpush3.msra.mxu1 %v1320_v14 }
 0x2b5   :  { %1084 = vmatprep.subr.mxu1 %v1222_v1 }
 0x2b6   :  { %1085 = vmatpush3.msra.mxu1 %v1326_v15 }
 0x2b7   :  { %1086 = vmatprep.subr.mxu1 %v1222_v1 }
 0x2b8   :  { %1087 = vmatpush3.msra.mxu1 %v1332_v16 }
 0x2b9   :  { %1088 = vmatprep.subr.mxu1 %v1222_v1 }
 0x2ba   :  { %1089 = vmatpush3.msra.mxu1 %v1338_v17 }
 0x2bb   :  { %1090 = vmatprep.subr.mxu1 %v1222_v1 }
 0x2bc   :  { %1091 = vmatpush3.msra.mxu1 %v1344_v18 }
 0x2bd   :  { %1092 = vmatprep.subr.mxu1 %v1222_v1 }
 0x2be   :  { %1093 = vmatpush3.msra.mxu1 %v1350_v19 }
 0x2bf   :  { %1094 = vmatprep.subr.mxu1 %v1222_v1 }
 0x2c0   :  { %1095 = vmatpush3.msra.mxu1 %v1356_v20 }
 0x2c1   :  { %1096 = vmatprep.subr.mxu1 %v1222_v1 }
 0x2c2   :  { %1097 = vmatpush3.msra.mxu1 %v1362_v21 }
 0x2c3   :  { %1098 = vmatprep.subr.mxu1 %v1222_v1 }
 0x2c4   :  { %1099 = vmatpush3.msra.mxu1 %v1368_v22 }
 0x2c5   :  { %1138 = vmatprep.subr.mxu1 %v1222_v1 }
 0x365   :  { %v424_v57 = vpop.f32.mrf.mxu1 }
 0x366   :  { %v428_v58 = vadd.f32 %v424_v57, %v137_v56 }
 0x367   :  { %v1032_v59 = vpop.f32.mrf.mxu1 }
 0x368   :  { %1187 = vtanh.f32 %v428_v58 }
 0x375   :  { %v1188_v60 = vpop.eup %1187 }
 0x376   :  { %1066 = vmatmul.mubr.f32.vlgmr.msra.gmra.mxu0 %v1188_v60 }
 0x377   :  { %1104 = vmatpush3.msra.mxu0 %v1275_v4  ;;  %1135 = vmatprep.mubr.msk.f32.mxu0 %vm1223_vm0, %v1222_v1 }
 0x378   :  { %1105 = vmatprep.subr.mxu0 %v1222_v1 }
 0x379   :  { %1106 = vmatpush3.msra.mxu0 %v1277_v5 }
 0x37a   :  { %1107 = vmatprep.subr.mxu0 %v1222_v1 }
 0x37b   :  { %1108 = vmatpush3.msra.mxu0 %v1282_v6 }
 0x37c   :  { %1109 = vmatprep.subr.mxu0 %v1222_v1 }
 0x37d   :  { %1110 = vmatpush3.msra.mxu0 %v1289_v8 }
 0x37e   :  { %1111 = vmatprep.subr.mxu0 %v1222_v1 }
 0x37f   :  { %1112 = vmatpush3.msra.mxu0 %v1300_v10 }
 0x380   :  { %1113 = vmatprep.subr.mxu0 %v1222_v1 }
 0x381   :  { %1114 = vmatpush3.msra.mxu0 %v1309_v12 }
 0x382   :  { %1115 = vmatprep.subr.mxu0 %v1222_v1 }
 0x383   :  { %1116 = vmatpush3.msra.mxu0 %v1314_v13 }
 0x384   :  { %1117 = vmatprep.subr.mxu0 %v1222_v1 }
 0x385   :  { %1118 = vmatpush3.msra.mxu0 %v1320_v14 }
 0x386   :  { %1119 = vmatprep.subr.mxu0 %v1222_v1 }
 0x387   :  { %1120 = vmatpush3.msra.mxu0 %v1326_v15 }
 0x388   :  { %1121 = vmatprep.subr.mxu0 %v1222_v1 }
 0x389   :  { %1122 = vmatpush3.msra.mxu0 %v1332_v16 }
 0x38a   :  { %1123 = vmatprep.subr.mxu0 %v1222_v1 }
 0x38b   :  { %1124 = vmatpush3.msra.mxu0 %v1338_v17 }
 0x38c   :  { %1125 = vmatprep.subr.mxu0 %v1222_v1 }
 0x38d   :  { %1126 = vmatpush3.msra.mxu0 %v1344_v18 }
 0x38e   :  { %1127 = vmatprep.subr.mxu0 %v1222_v1 }
 0x38f   :  { %1128 = vmatpush3.msra.mxu0 %v1350_v19 }
 0x390   :  { %1129 = vmatprep.subr.mxu0 %v1222_v1 }
 0x391   :  { %1130 = vmatpush3.msra.mxu0 %v1356_v20 }
 0x392   :  { %1131 = vmatprep.subr.mxu0 %v1222_v1 }
 0x393   :  { %1132 = vmatpush3.msra.mxu0 %v1362_v21 }
 0x394   :  { %1133 = vmatprep.subr.mxu0 %v1222_v1 }
 0x395   :  { %1134 = vmatpush3.msra.mxu0 %v1368_v22 }
 0x436   :  { %v496_v23 = vpop.f32.mrf.mxu0 }
 0x437   :  { %v500_v24 = vadd.f32 %v496_v23, %v138_v11 }
 0x438   :  { %v1067_v25 = vpop.f32.mrf.mxu0 }
 0x439   :  { %1189 = vtanh.f32 %v500_v24 }
 0x446   :  { %v1190_v27 = vpop.eup %1189 }
 0x447   :  { %1101 = vmatmul.mubr.f32.vlgmr.msra.gmra.mxu1 %v1190_v27 }
 0x448   :  { %1139 = vmatpush3.msra.mxu1 %v1275_v4  ;;  %1170 = vmatprep.mubr.msk.f32.mxu1 %vm1223_vm0, %v1222_v1  ;;  %v102_v4 = vsub.s32 6, %v1273_v3 }
 0x449   :  { %1140 = vmatprep.subr.mxu1 %v1222_v1 }
 0x44a   :  { %1141 = vmatpush3.msra.mxu1 %v1277_v5  ;;  %v103_v5 = vrot.slane %v1296_v9, %v102_v4 }
 0x44b   :  { %1142 = vmatprep.subr.mxu1 %v1222_v1 }
 0x44c   :  { %1143 = vmatpush3.msra.mxu1 %v1282_v6  ;;  %105 = vbcast.lane.b32.xlu0 %v103_v5, 256  ;;  %v99_v6 = vpop.permute.xlu1 %98 }
 0x44d   :  { %1144 = vmatprep.subr.mxu1 %v1222_v1 }
 0x44e   :  { %1145 = vmatpush3.msra.mxu1 %v1289_v8  ;;  %v125_v8 = vmul.f32 %v1420_v26, %v99_v6 }
 0x44f   :  { %1146 = vmatprep.subr.mxu1 %v1222_v1 }
 0x450   :  { %1147 = vmatpush3.msra.mxu1 %v1300_v10  ;;  %v139_v10 = vadd.f32 %v1426_v28, %v125_v8 }
 0x451   :  { %1148 = vmatprep.subr.mxu1 %v1222_v1 }
 0x452   :  { %1149 = vmatpush3.msra.mxu1 %v1309_v12 }
 0x453   :  { %1150 = vmatprep.subr.mxu1 %v1222_v1 }
 0x454   :  { %1151 = vmatpush3.msra.mxu1 %v1314_v13 }
 0x455   :  { %1152 = vmatprep.subr.mxu1 %v1222_v1 }
 0x456   :  { %1153 = vmatpush3.msra.mxu1 %v1320_v14 }
 0x457   :  { %1154 = vmatprep.subr.mxu1 %v1222_v1 }
 0x458   :  { %1155 = vmatpush3.msra.mxu1 %v1326_v15 }
 0x459   :  { %1156 = vmatprep.subr.mxu1 %v1222_v1 }
 0x45a   :  { %1157 = vmatpush3.msra.mxu1 %v1332_v16 }
 0x45b   :  { %1158 = vmatprep.subr.mxu1 %v1222_v1 }
 0x45c   :  { %1159 = vmatpush3.msra.mxu1 %v1338_v17 }
 0x45d   :  { %1160 = vmatprep.subr.mxu1 %v1222_v1 }
 0x45e   :  { %1161 = vmatpush3.msra.mxu1 %v1344_v18 }
 0x45f   :  { %1162 = vmatprep.subr.mxu1 %v1222_v1 }
 0x460   :  { %1163 = vmatpush3.msra.mxu1 %v1350_v19 }
 0x461   :  { %1164 = vmatprep.subr.mxu1 %v1222_v1 }
 0x462   :  { %1165 = vmatpush3.msra.mxu1 %v1356_v20 }
 0x463   :  { %1166 = vmatprep.subr.mxu1 %v1222_v1 }
 0x464   :  { %1167 = vmatpush3.msra.mxu1 %v1362_v21 }
 0x465   :  { %1168 = vmatprep.subr.mxu1 %v1222_v1  ;;  %v109_v1 = vsub.s32 7, %v1273_v3 }
 0x466   :  { %1169 = vmatpush3.msra.mxu1 %v1368_v22 }
 0x467   :  { %v110_v16 = vrot.slane %v1296_v9, %v109_v1 }
 0x469   :  { %112 = vbcast.lane.b32.xlu1 %v110_v16, 256 }
 0x46d   :  { %731 = vperm.xlu1 %1179, %v728_v30  }
 0x4be   :  { %v106_v17 = vpop.permute.xlu0 %105 }
 0x4bf   :  { %v126_v18 = vmul.f32 %v1420_v26, %v106_v17 }
 0x4c1   :  { %v140_v19 = vadd.f32 %v1426_v28, %v126_v18 }
 0x4db   :  { %v113_v32 = vpop.permute.xlu1 %112 }
 0x4dc   :  { %v127_v9 = vmul.f32 %v1420_v26, %v113_v32  ;;  %v744_v26 = vsub.s32 %v741_v41, %v1273_v3 }
 0x4de   :  { %v141_v33 = vadd.f32 %v1426_v28, %v127_v9 }
 0x4e8   :  { %v732_v40 = vpop.permute.xlu1 %731 }
 0x4e9   :  { %v737_v42 = vrot.slane %v732_v40, %v60_v7 }
 0x507   :  { %v568_v12 = vpop.f32.mrf.mxu1 }
 0x508   :  { %v572_v13 = vadd.f32 %v568_v12, %v139_v10 }
 0x509   :  { %v1102_v14 = vpop.f32.mrf.mxu1 }
 0x50a   :  { %1191 = vtanh.f32 %v572_v13 }
 0x517   :  { %v1192_v15 = vpop.eup %1191 }
 0x518   :  { %1136 = vmatmul.mubr.f32.vlgmr.msra.gmra.mxu0 %v1192_v15 }
 0x5d8   :  { %v640_v20 = vpop.f32.mrf.mxu0 }
 0x5d9   :  { %v644_v21 = vadd.f32 %v640_v20, %v140_v19 }
 0x5da   :  { %v1137_v22 = vpop.f32.mrf.mxu0 }
 0x5db   :  { %1193 = vtanh.f32 %v644_v21 }
 0x5e8   :  { %v1194_v29 = vpop.eup %1193 }
 0x5e9   :  { %1171 = vmatmul.mubr.f32.vlgmr.msra.gmra.mxu1 %v1194_v29 }
 0x6a9   :  { %v712_v34 = vpop.f32.mrf.mxu1 }
 0x6aa   :  { %v716_v35 = vadd.f32 %v712_v34, %v141_v33 }
 0x6ab   :  { %v1172_v36 = vpop.f32.mrf.mxu1 }
 0x6ac   :  { %1195 = vtanh.f32 %v716_v35 }
 0x6b9   :  { %v1196_v38 = vpop.eup %1195 }
 0x6ba   :  { %v725_v39 = vmul.f32 %v1196_v38, %v756_v37 }
 0x6bc   :  { %726 = vadd.xlane.f32.xlu0 %v725_v39 }
 0x745   :  { %v727_v28 = vpop.xlane.xlu0 %726 }
 0x746   :  { %v738_v43 = vadd.f32 %v737_v42, %v727_v28 }
 0x748   :  { %v745_v44 = vrot.slane %v738_v43, %v744_v26 }
 0x74a   :  { %748 = vst.msk [vmem:[%s1639_s6] sm:$0x1] %vm747_vm1, %v745_v44 }
 0x74b   :  { %753 = vsyncpa [#allocation4], 1 }

</bundles_post_ra>
